<compile_context>
chip_gen: v5e
topology: v5e:2x2
jax: 0.10.0
libtpu: 0.0.40
codegen_flags: <defaults>
</compile_context>

<pallas_src>
import jax
import jax.numpy as jnp
from jax.experimental import pallas as pl
from jax.experimental.pallas import tpu as pltpu


def _round_up(x, m):
    return ((x + m - 1) // m) * m


def _seq_label_kernel(x_ref, w1_ref, b1_ref, w23_ref, b23_ref, sub_ref, obj_ref):
    # x_ref: (TM, H) f32 row tile; weights bf16; biases f32; outputs f32.
    x = x_ref[...].astype(w1_ref.dtype)          # in-kernel f32 -> bf16 cast

    # linear -> bias -> ReLU   (dropout == identity in eval mode)
    tmp = jnp.dot(x, w1_ref[...], preferred_element_type=jnp.float32)
    tmp = jnp.maximum(tmp + b1_ref[...], 0.0)

    # fused hidden2tag_sub || hidden2tag_obj projection: one MXU matmul
    tmp = tmp.astype(w23_ref.dtype)
    fused = jnp.dot(tmp, w23_ref[...], preferred_element_type=jnp.float32)
    fused = fused + b23_ref[...]

    t = sub_ref.shape[-1]                        # static tag_size
    sub_ref[...] = fused[:, :t].astype(sub_ref.dtype)
    obj_ref[...] = fused[:, t:].astype(obj_ref.dtype)


def prepare_params(params, compute_dtype=jnp.bfloat16):
    """One-time (param-load-time) fusion / casting of the module's weights.

    params: (w1, b1, w2, b2, w3, b3), weights stored as (in, out) --
    the transpose of PyTorch nn.Linear's (out, in) storage.
    """
    w1, b1, w2, b2, w3, b3 = params
    half = w1.shape[1]
    tag_size = w2.shape[1]
    w23 = jnp.concatenate([w2, w3], axis=1)                    # (half, 2T+1)
    b23 = jnp.concatenate([b2, b3], axis=0)
    return {
        "w1": w1.astype(compute_dtype),                        # (H, half)
        "b1": b1.reshape(1, half).astype(jnp.float32),         # (1, half)
        "w23": w23.astype(compute_dtype),                      # (half, 2T+1)
        "b23": b23.reshape(1, 2 * tag_size + 1).astype(jnp.float32),
        "tag_size": int(tag_size),
    }


def sequence_label_for_triple(input_features, prepared, *, tile_m=512):
    """Forward pass. input_features: (bs, seq_len, hidden), f32 (or bf16).

    Returns (sub_output, obj_output):
      (bs, seq_len, tag_size) and (bs, seq_len, tag_size + 1), float32.
    """
    w1, b1 = prepared["w1"], prepared["b1"]
    w23, b23 = prepared["w23"], prepared["b23"]
    tag_size = prepared["tag_size"]

    bs, seq_len, hidden = input_features.shape
    half = w1.shape[1]
    out_fused = w23.shape[1]                      # 2*tag_size + 1

    M = bs * seq_len
    x2d = input_features.reshape(M, hidden)       # free reshape, no copy/pad/cast

    # Row tile: multiple of 8 (sublanes); capped at ceil(M/2) so the parallel
    # grid has >=2 steps whenever possible (v7x megacore sharding).
    tile_m_eff = min(tile_m, max(8, _round_up(pl.cdiv(M, 2), 8)))
    n_tiles = pl.cdiv(M, tile_m_eff)              # ragged last block is fine

    # Explicit scoped-VMEM budget: x tile (f32, 2 bufs) + outputs (2 bufs)
    # + resident weights/biases + in-kernel intermediates, with 2x margin.
    need = (2 * tile_m_eff * hidden * 4
            + 2 * (hidden * half + half * out_fused) * 2
            + 2 * (half + out_fused) * 4
            + 2 * tile_m_eff * (2 * tag_size + 1) * 4
            + tile_m_eff * (half + out_fused) * 4)
    vmem_limit = int(min(max(2 * need, 32 << 20), 64 << 20))

    sub2d, obj2d = pl.pallas_call(
        _seq_label_kernel,
        out_shape=(
            jax.ShapeDtypeStruct((M, tag_size), jnp.float32),
            jax.ShapeDtypeStruct((M, tag_size + 1), jnp.float32),
        ),
        grid_spec=pltpu.PrefetchScalarGridSpec(
            num_scalar_prefetch=0,
            grid=(n_tiles,),
            in_specs=[
                pl.BlockSpec((tile_m_eff, hidden), lambda i: (i, 0)),   # x tile
                pl.BlockSpec((hidden, half), lambda i: (0, 0)),         # W1 (resident)
                pl.BlockSpec((1, half), lambda i: (0, 0)),              # b1
                pl.BlockSpec((half, out_fused), lambda i: (0, 0)),      # W2||W3
                pl.BlockSpec((1, out_fused), lambda i: (0, 0)),         # b2||b3
            ],
            out_specs=[
                pl.BlockSpec((tile_m_eff, tag_size), lambda i: (i, 0)),
                pl.BlockSpec((tile_m_eff, tag_size + 1), lambda i: (i, 0)),
            ],
        ),
        compiler_params=pltpu.CompilerParams(
            dimension_semantics=("parallel",),
            vmem_limit_bytes=vmem_limit),
    )(x2d, w1, b1, w23, b23)

    return (sub2d.reshape(bs, seq_len, tag_size),
            obj2d.reshape(bs, seq_len, tag_size + 1))


def init_params(key, hidden_size, tag_size):
    """Deterministic param init mirroring the PyTorch module's shapes.

    Weights stored as (in_features, out_features)."""
    half = hidden_size // 2
    k1, k2, k3, k4, k5, k6 = jax.random.split(key, 6)
    s = 0.05
    w1 = s * jax.random.normal(k1, (hidden_size, half), jnp.float32)
    b1 = s * jax.random.normal(k2, (half,), jnp.float32)
    w2 = s * jax.random.normal(k3, (half, tag_size), jnp.float32)
    b2 = s * jax.random.normal(k4, (tag_size,), jnp.float32)
    w3 = s * jax.random.normal(k5, (half, tag_size + 1), jnp.float32)
    b3 = s * jax.random.normal(k6, (tag_size + 1,), jnp.float32)
    return (w1, b1, w2, b2, w3, b3)


def _reference(input_features, params):
    w1, b1, w2, b2, w3, b3 = params
    tmp = jnp.maximum(input_features @ w1 + b1, 0.0)
    return tmp @ w2 + b2, tmp @ w3 + b3


if __name__ == "__main__":
    bs, seq_len, hidden, tag_size = 2, 8, 32, 4

    key = jax.random.PRNGKey(0)
    kx, kp = jax.random.split(key)
    x = jax.random.normal(kx, (bs, seq_len, hidden), jnp.float32)
    params = init_params(kp, hidden, tag_size)

    prepared = prepare_params(params)              # one-time weight prep
    sub_out, obj_out = sequence_label_for_triple(x, prepared)
    jax.block_until_ready((sub_out, obj_out))

    # sanity check vs plain-JAX f32 reference (bf16 weight streams -> 2e-2 tol)
    ref_sub, ref_obj = _reference(x, params)
    assert sub_out.shape == (bs, seq_len, tag_size)
    assert obj_out.shape == (bs, seq_len, tag_size + 1)
    assert jnp.allclose(sub_out, ref_sub, atol=2e-2, rtol=2e-2)
    assert jnp.allclose(obj_out, ref_obj, atol=2e-2, rtol=2e-2)

    print("KERNEL_OK")
</pallas_src>

<mosaic_0001>
module attributes {stable_mosaic.version = 11 : i64} {
  func.func @_seq_label_kernel(%arg0: i32, %arg1: memref<8x32xf32, #tpu.memory_space<vmem>>, %arg2: memref<32x16xbf16, #tpu.memory_space<vmem>>, %arg3: memref<1x16xf32, #tpu.memory_space<vmem>>, %arg4: memref<16x9xbf16, #tpu.memory_space<vmem>>, %arg5: memref<1x9xf32, #tpu.memory_space<vmem>>, %arg6: memref<8x4xf32, #tpu.memory_space<vmem>>, %arg7: memref<8x5xf32, #tpu.memory_space<vmem>>) attributes {dimension_semantics = [#tpu.dimension_semantics<parallel>], iteration_bounds = array<i64: 2>, scalar_prefetch = 0 : i64, scratch_operands = 0 : i64, tpu.core_type = #tpu.core_type<tc>, window_params = [{transform_indices = @transform_0, window_bounds = array<i64: 8, 32>}, {pipeline_mode = #tpu.pipeline_mode<synchronous>, transform_indices = @transform_1, window_bounds = array<i64: 32, 16>}, {pipeline_mode = #tpu.pipeline_mode<synchronous>, transform_indices = @transform_2, window_bounds = array<i64: 1, 16>}, {pipeline_mode = #tpu.pipeline_mode<synchronous>, transform_indices = @transform_3, window_bounds = array<i64: 16, 9>}, {pipeline_mode = #tpu.pipeline_mode<synchronous>, transform_indices = @transform_4, window_bounds = array<i64: 1, 9>}, {transform_indices = @transform_5, window_bounds = array<i64: 8, 4>}, {transform_indices = @transform_6, window_bounds = array<i64: 8, 5>}]} {
    %c0 = arith.constant 0 : index
    %c0_0 = arith.constant 0 : index
    %0 = vector.load %arg1[%c0, %c0_0] : memref<8x32xf32, #tpu.memory_space<vmem>>, vector<8x32xf32>
    %1 = arith.truncf %0 : vector<8x32xf32> to vector<8x32xbf16>
    %c0_1 = arith.constant 0 : index
    %c0_2 = arith.constant 0 : index
    %2 = vector.load %arg2[%c0_1, %c0_2] : memref<32x16xbf16, #tpu.memory_space<vmem>>, vector<32x16xbf16>
    %cst = arith.constant dense<0.000000e+00> : vector<8x16xf32>
    %3 = tpu.matmul %1, %2, %cst {dimension_numbers = #tpu.dot_dimension_numbers<[1], [0], [0], [1], [0, 0, 1, 1], [], []>} : vector<8x32xbf16>, vector<32x16xbf16>, vector<8x16xf32> -> vector<8x16xf32>
    %c0_3 = arith.constant 0 : index
    %c0_4 = arith.constant 0 : index
    %4 = vector.load %arg3[%c0_3, %c0_4] : memref<1x16xf32, #tpu.memory_space<vmem>>, vector<1x16xf32>
    %5 = vector.broadcast %4 : vector<1x16xf32> to vector<8x16xf32>
    %6 = arith.addf %3, %5 : vector<8x16xf32>
    %cst_5 = arith.constant 0.000000e+00 : f32
    %7 = vector.broadcast %cst_5 : f32 to vector<8x16xf32>
    %8 = arith.maximumf %6, %7 : vector<8x16xf32>
    %9 = arith.truncf %8 : vector<8x16xf32> to vector<8x16xbf16>
    %c0_6 = arith.constant 0 : index
    %c0_7 = arith.constant 0 : index
    %10 = vector.load %arg4[%c0_6, %c0_7] : memref<16x9xbf16, #tpu.memory_space<vmem>>, vector<16x9xbf16>
    %cst_8 = arith.constant dense<0.000000e+00> : vector<8x9xf32>
    %11 = tpu.matmul %9, %10, %cst_8 {dimension_numbers = #tpu.dot_dimension_numbers<[1], [0], [0], [1], [0, 0, 1, 1], [], []>} : vector<8x16xbf16>, vector<16x9xbf16>, vector<8x9xf32> -> vector<8x9xf32>
    %c0_9 = arith.constant 0 : index
    %c0_10 = arith.constant 0 : index
    %12 = vector.load %arg5[%c0_9, %c0_10] : memref<1x9xf32, #tpu.memory_space<vmem>>, vector<1x9xf32>
    %13 = vector.broadcast %12 : vector<1x9xf32> to vector<8x9xf32>
    %14 = arith.addf %11, %13 : vector<8x9xf32>
    %15 = vector.extract_strided_slice %14 {offsets = [0, 0], sizes = [8, 4], strides = [1, 1]} : vector<8x9xf32> to vector<8x4xf32>
    %c0_11 = arith.constant 0 : index
    %c0_12 = arith.constant 0 : index
    %16 = vector.load %arg6[%c0_11, %c0_12] : memref<8x4xf32, #tpu.memory_space<vmem>>, vector<8x4xf32>
    tpu.vector_store %arg6[%c0_11, %c0_12], %15 {strides = array<i32>} : memref<8x4xf32, #tpu.memory_space<vmem>>, vector<8x4xf32>,
    %17 = vector.extract_strided_slice %14 {offsets = [0, 4], sizes = [8, 5], strides = [1, 1]} : vector<8x9xf32> to vector<8x5xf32>
    %c0_13 = arith.constant 0 : index
    %c0_14 = arith.constant 0 : index
    %18 = vector.load %arg7[%c0_13, %c0_14] : memref<8x5xf32, #tpu.memory_space<vmem>>, vector<8x5xf32>
    tpu.vector_store %arg7[%c0_13, %c0_14], %17 {strides = array<i32>} : memref<8x5xf32, #tpu.memory_space<vmem>>, vector<8x5xf32>,
    return
  }
  func.func @transform_0(%arg0: i32) -> (i32, i32) {
    %c0_i32 = arith.constant 0 : i32
    %c0_i32_0 = arith.constant 0 : i32
    return %arg0, %c0_i32 : i32, i32
  }
  func.func @transform_1(%arg0: i32) -> (i32, i32) {
    %c0_i32 = arith.constant 0 : i32
    %c0_i32_0 = arith.constant 0 : i32
    %c0_i32_1 = arith.constant 0 : i32
    return %c0_i32, %c0_i32_0 : i32, i32
  }
  func.func @transform_2(%arg0: i32) -> (i32, i32) {
    %c0_i32 = arith.constant 0 : i32
    %c0_i32_0 = arith.constant 0 : i32
    %c0_i32_1 = arith.constant 0 : i32
    return %c0_i32, %c0_i32_0 : i32, i32
  }
  func.func @transform_3(%arg0: i32) -> (i32, i32) {
    %c0_i32 = arith.constant 0 : i32
    %c0_i32_0 = arith.constant 0 : i32
    %c0_i32_1 = arith.constant 0 : i32
    return %c0_i32, %c0_i32_0 : i32, i32
  }
  func.func @transform_4(%arg0: i32) -> (i32, i32) {
    %c0_i32 = arith.constant 0 : i32
    %c0_i32_0 = arith.constant 0 : i32
    %c0_i32_1 = arith.constant 0 : i32
    return %c0_i32, %c0_i32_0 : i32, i32
  }
  func.func @transform_5(%arg0: i32) -> (i32, i32) {
    %c0_i32 = arith.constant 0 : i32
    %c0_i32_0 = arith.constant 0 : i32
    return %arg0, %c0_i32 : i32, i32
  }
  func.func @transform_6(%arg0: i32) -> (i32, i32) {
    %c0_i32 = arith.constant 0 : i32
    %c0_i32_0 = arith.constant 0 : i32
    return %arg0, %c0_i32 : i32, i32
  }
}

</mosaic_0001>

<bundles_post_ra>
// kernel: tpu_custom_call.1
= control target key start
LH: loop header
LB: loop body
LE: loop exit
PB: predicated region body
PF: predicated region fallthrough
CT: control target
= control target key end

     0   :  { %s503_s21 = smov 0   ;;  %s543_s0 = inlined_call_operand.vmem [shape: f32[16,32], index: 0, kind: input, shape index: {}]   ;;  %s544_s1 = inlined_call_operand.vmem [shape: bf16[32,16], index: 1, kind: input, shape index: {}]   ;;  %s545_s2 = inlined_call_operand.vmem [shape: f32[1,16], index: 2, kind: input, shape index: {}]   ;;  %s546_s3 = inlined_call_operand.vmem [shape: bf16[16,9], index: 3, kind: input, shape index: {}]   ;;  %s547_s4 = inlined_call_operand.vmem [shape: f32[1,9], index: 4, kind: input, shape index: {}]   ;;  %s548_s5 = inlined_call_operand.vmem [shape: f32[16,4], index: 5, kind: output, shape index: {0}]   ;;  %s549_s6 = inlined_call_operand.vmem [shape: f32[16,5], index: 6, kind: output, shape index: {1}]  }
   0x1 LB: > { %s421_s22 = sadd.s32 4294967295, %s465_s21   ;;  %p425_p0 = scmp.ge.s32.totalorder %s465_s21, 1  ;;  %s465_s21 = sphi %s503_s21, %s17_s21  }
   0x2   : > { %p214_p1 = scmp.lt.s32.totalorder %s465_s21, 3 }
   0x4   : > { %p215_p2 = pnand %p425_p0, %p214_p1 }
   0x5   : > { %p246_p3 = scmp.lt.s32.totalorder (!%p215_p2), %s421_s22, 1  ;;  %s467_s16 = smov (!%p215_p2), 124  }
   0x6   : > { %218 = sbr.rel (%p215_p2) target bundleno = 395 (0x18b), region = 40 }
   0xb   : > { %v446_v0 = vld [vmem:[%s544_s1 + $0x8] sm:$0xff]  ;;  %v445_v1 = vld [vmem:[%s544_s1] sm:$0xff]  ;;  %s551_s22 = smov (!%p246_p3, %s421_s22), 1  ;;  %vm281_vm0 = vcmask 261120   ;;  %vm312_vm1 = vcmask 130048   ;;  %vm329_vm2 = vcmask 31744  }
   0xc   : > { %291 = vmatpush.bf16.msra.mxu0 %v446_v0  ;;  %s517_s27 = sshll.u32 %s551_s22, 3  ;;  %v447_v4 = vld [vmem:[%s546_s3] sm:$0xff]  ;;  %vm335_vm3 = vcmask 39936  }
   0xd   : > { %s249_s30 = scalar_lea.vmem %s543_s0, %s517_s27  ;;  %323 = vmatpush.bf16.msra.mxu1 %v447_v4  ;;  %v457_v5 = vld [vmem:[%s545_s2] ss:$0 sm:$0xff]  ;;  %s253_s15 = scalar_lea.vmem %s548_s5, %s517_s27 }
   0xe   : > { %v259_v2 = vld [vmem:[%s249_s30] sm:$0xff]  ;;  %s257_s19 = scalar_lea.vmem %s549_s6, %s517_s27 }
   0xf   : > { %v260_v3 = vpack.c.bf16 %v259_v2, %v259_v2  ;;  %v458_v11 = vld [vmem:[%s547_s4] ss:$0 sm:$0xff] }
  0x10   : > { %292 = vmatpush.bf16.msra.mxu0 %v445_v1 }
  0x13   : > { %437 = vmatmul.msk.bf16.vlgmr.msra.gmra.mxu0 %vm281_vm0, %v260_v3 }
  0x90   : > { %v294_v6 = vpop.f32.mrf.mxu0 }
  0x91   : > { %v295_v7 = vadd.f32 %v457_v5, %v294_v6 }
  0x93   : > { %v298_v8 = vmax.f32 %v295_v7, 0.0 }
  0x95   : > { %v299_v9 = vpack.c.bf16 %v298_v8, %v298_v8 }
  0x97   : > { %442 = vmatmul.msk.bf16.vlgmr.msra.gmra.mxu1 %vm312_vm1, %v299_v9 }
  0x98   : > { %v296_v10 = vpop.f32.mrf.mxu0 }
 0x114   : > { %v325_v12 = vpop.f32.mrf.mxu1 }
 0x115   : > { %v326_v13 = vadd.f32 %v458_v11, %v325_v12 }
 0x117   : > { %330 = vst.msk [vmem:[%s253_s15] sm:$0xff] %vm329_vm2, %v326_v13  ;;  %332 = vrot.lane.b32.xlu0 %v326_v13, %s467_s16 }
 0x11c   : > { %v327_v14 = vpop.f32.mrf.mxu1 }
 0x189   : > { %v333_v15 = vpop.permute.xlu0 %332 }
 0x18a   : > { %336 = vst.msk [vmem:[%s257_s19] sm:$0xff] %vm335_vm3, %v333_v15 }
 0x18b PF: > { %s17_s21 = sadd.s32 1, %s465_s21  }
 0x18c   : > { %p14_p4 = scmp.ge.s32.totalorder %s17_s21, 4  }
 0x18e   :  { %16 = sbr.rel (!%p14_p4) target bundleno = 1 (0x1), region = 82 }

</bundles_post_ra>
